<compile_context>
chip_gen: v5e
topology: v5e:2x2
jax: 0.10.0
libtpu: 0.0.40
codegen_flags: <defaults>
</compile_context>

<pallas_src>
import math

import jax
import jax.numpy as jnp
from jax import lax
from jax.experimental import pallas as pl
from jax.experimental.pallas import tpu as pltpu


def _mha_kernel(q_ref, k_ref, v_ref,
                wq_ref, bq_ref, wk_ref, bk_ref, wv_ref, bv_ref,
                wp_ref, bp_ref,
                o_ref, acc_ref):
    """One grid step = (batch n, S-tile si, head h).

    q_ref: (1, bS, E), k_ref/v_ref: (1, T, E),
    w{q,k,v}_ref: (1, E, H), b{q,k,v}_ref: (1, 1, H),
    wp_ref: (1, H, E), bp_ref: (1, E),
    o_ref: (1, bS, E), acc_ref: (bS, E) f32 scratch (resident across h).
    """
    h = pl.program_id(2)
    compute_dtype = q_ref.dtype

    @pl.when(h == 0)
    def _init():
        # Start the output-projection accumulator with the proj bias.
        acc_ref[...] = jnp.broadcast_to(bp_ref[...], acc_ref.shape).astype(jnp.float32)

    q_in = q_ref[0]          # (bS, E)
    k_in = k_ref[0]          # (T, E)
    v_in = v_ref[0]          # (T, E)
    wq = wq_ref[0]           # (E, H)  (1/sqrt(H) already folded in)
    wk = wk_ref[0]           # (E, H)
    wv = wv_ref[0]           # (E, H)
    wp = wp_ref[0]           # (H, E)

    # Per-head projections (whole-tile MXU matmuls; f32 accumulate).
    Qh = (jnp.dot(q_in, wq, preferred_element_type=jnp.float32)
          + bq_ref[0]).astype(compute_dtype)                     # (bS, H)
    Kh = (jnp.dot(k_in, wk, preferred_element_type=jnp.float32)
          + bk_ref[0]).astype(compute_dtype)                     # (T, H)
    Vh = (jnp.dot(v_in, wv, preferred_element_type=jnp.float32)
          + bv_ref[0]).astype(compute_dtype)                     # (T, H)

    # Scores: contract over head_dim without materializing K^T.
    scores = lax.dot_general(Qh, Kh, (((1,), (1,)), ((), ())),
                             preferred_element_type=jnp.float32)  # (bS, T)

    # Softmax over T; statistics kept in f32. attn_drop: identity (eval mode).
    m = jnp.max(scores, axis=-1, keepdims=True)
    p = jnp.exp(scores - m)
    denom = jnp.sum(p, axis=-1, keepdims=True)                    # (bS, 1)

    ctx = jnp.dot(p.astype(compute_dtype), Vh,
                  preferred_element_type=jnp.float32)             # (bS, H)
    # Fold 1/denom into the small (bS, H) context instead of the (bS, T) probs.
    ctx = ctx * pl.reciprocal(denom)

    # Accumulate this head's slice of the output projection.
    acc_ref[...] += jnp.dot(ctx.astype(compute_dtype), wp,
                            preferred_element_type=jnp.float32)   # (bS, E)

    @pl.when(h == pl.num_programs(2) - 1)
    def _finalize():
        o_ref[0] = acc_ref[...].astype(o_ref.dtype)


def prepare_mha_params(params, *, num_heads):
    """One-time (hoistable) weight prep: head-major layout, scale folded into Q.

    params: nn.Linear-style weights w* of shape (E_out, E_in), biases b* of (E,).
    """
    E = params["wq"].shape[0]
    assert E % num_heads == 0
    H = E // num_heads
    scale = 1.0 / math.sqrt(H)

    def head_major_in(w):   # (E_out, E_in) -> (n_head, E_in, H): x @ w_hm[h] == (x @ w.T)[:, hH:(h+1)H]
        return jnp.transpose(w.reshape(num_heads, H, E), (0, 2, 1))

    return {
        "wq": head_major_in(params["wq"] * scale),
        "bq": (params["bq"] * scale).reshape(num_heads, 1, H),
        "wk": head_major_in(params["wk"]),
        "bk": params["bk"].reshape(num_heads, 1, H),
        "wv": head_major_in(params["wv"]),
        "bv": params["bv"].reshape(num_heads, 1, H),
        # (n_head, H, E): ctx_h @ wp_hm[h] summed over h == concat(ctx) @ wp.T
        "wp": params["wp"].T.reshape(num_heads, H, E),
        "bp": params["bp"].reshape(1, E),
    }


def _pick_block_s(S):
    if S <= 256:
        return S
    for bs in (256, 128, 64, 32, 16, 8):
        if S % bs == 0:
            return bs
    return S


def multi_head_attention(query, key, value, prepped, *, num_heads):
    """Pallas wrapper. query:(N,S,E), key/value:(N,T,E). Returns (N,S,E)."""
    N, S, E = query.shape
    _, T, _ = value.shape
    assert E % num_heads == 0
    H = E // num_heads

    block_s = _pick_block_s(S)
    n_sblk = S // block_s
    grid = (N, n_sblk, num_heads)

    w_in_spec = pl.BlockSpec((1, E, H), lambda n, si, h: (h, 0, 0))
    b_in_spec = pl.BlockSpec((1, 1, H), lambda n, si, h: (h, 0, 0))

    out = pl.pallas_call(
        _mha_kernel,
        out_shape=jax.ShapeDtypeStruct((N, S, E), query.dtype),
        grid=grid,
        in_specs=[
            pl.BlockSpec((1, block_s, E), lambda n, si, h: (n, si, 0)),  # query
            pl.BlockSpec((1, T, E), lambda n, si, h: (n, 0, 0)),         # key
            pl.BlockSpec((1, T, E), lambda n, si, h: (n, 0, 0)),         # value
            w_in_spec, b_in_spec,                                        # q proj
            w_in_spec, b_in_spec,                                        # k proj
            w_in_spec, b_in_spec,                                        # v proj
            pl.BlockSpec((1, H, E), lambda n, si, h: (h, 0, 0)),         # out proj W
            pl.BlockSpec((1, E), lambda n, si, h: (0, 0)),               # out proj b
        ],
        out_specs=pl.BlockSpec((1, block_s, E), lambda n, si, h: (n, si, 0)),
        scratch_shapes=[pltpu.VMEM((block_s, E), jnp.float32)],
        compiler_params=pltpu.CompilerParams(
            dimension_semantics=("parallel", "parallel", "arbitrary")),
    )(query, key, value,
      prepped["wq"], prepped["bq"], prepped["wk"], prepped["bk"],
      prepped["wv"], prepped["bv"], prepped["wp"], prepped["bp"])
    return out


def reference_mha(query, key, value, params, *, num_heads):
    """Plain-JAX reference matching the PyTorch forward (dropout in eval)."""
    N, S, E = query.shape
    _, T, _ = value.shape
    H = E // num_heads

    def linear(x, w, b):  # w: (out, in), like nn.Linear
        return jnp.einsum("nse,oe->nso", x, w) + b

    Q = linear(query, params["wq"], params["bq"]).reshape(N, S, num_heads, H).transpose(0, 2, 1, 3)
    K = linear(key,   params["wk"], params["bk"]).reshape(N, T, num_heads, H).transpose(0, 2, 1, 3)
    V = linear(value, params["wv"], params["bv"]).reshape(N, T, num_heads, H).transpose(0, 2, 1, 3)

    scores = jnp.einsum("nhse,nhte->nhst", Q, K) / math.sqrt(H)
    attn = jax.nn.softmax(scores, axis=-1)
    out = jnp.einsum("nhst,nhte->nhse", attn, V)
    out = out.transpose(0, 2, 1, 3).reshape(N, S, E)
    out = jnp.einsum("nse,oe->nso", out, params["wp"]) + params["bp"]
    return out


def init_params(key, embed_dim):
    """Deterministic nn.Linear-style init: U(-1/sqrt(in), 1/sqrt(in))."""
    bound = 1.0 / math.sqrt(embed_dim)
    keys = jax.random.split(key, 8)
    p = {}
    names = ["q", "k", "v", "p"]
    for i, nm in enumerate(names):
        p["w" + nm] = jax.random.uniform(keys[2 * i], (embed_dim, embed_dim),
                                         jnp.float32, -bound, bound)
        p["b" + nm] = jax.random.uniform(keys[2 * i + 1], (embed_dim,),
                                         jnp.float32, -bound, bound)
    return p


if __name__ == "__main__":
    N, S, T, E = 2, 8, 8, 32
    num_heads = 2

    root = jax.random.PRNGKey(0)
    k_param, k_q, k_kv = jax.random.split(root, 3)
    params = init_params(k_param, E)

    query = jax.random.normal(k_q, (N, S, E), jnp.float32)
    kv = jax.random.normal(k_kv, (N, T, E), jnp.float32)

    # Weight prep is done once (hoisted out of the per-call hot path).
    prepped = prepare_mha_params(params, num_heads=num_heads)

    out = multi_head_attention(query, kv, kv, prepped, num_heads=num_heads)
    out = jax.block_until_ready(out)

    ref = reference_mha(query, kv, kv, params, num_heads=num_heads)
    assert out.shape == (N, S, E)
    max_err = jnp.max(jnp.abs(out - ref))
    assert jnp.allclose(out, ref, atol=1e-4, rtol=1e-4), f"max abs err {max_err}"

    print("KERNEL_OK")
</pallas_src>

<mosaic_0001>
module attributes {stable_mosaic.version = 11 : i64} {
  func.func @_mha_kernel(%arg0: i32, %arg1: i32, %arg2: i32, %arg3: memref<1x8x32xf32, #tpu.memory_space<vmem>>, %arg4: memref<1x8x32xf32, #tpu.memory_space<vmem>>, %arg5: memref<1x8x32xf32, #tpu.memory_space<vmem>>, %arg6: memref<1x32x16xf32, #tpu.memory_space<vmem>>, %arg7: memref<1x1x16xf32, #tpu.memory_space<vmem>>, %arg8: memref<1x32x16xf32, #tpu.memory_space<vmem>>, %arg9: memref<1x1x16xf32, #tpu.memory_space<vmem>>, %arg10: memref<1x32x16xf32, #tpu.memory_space<vmem>>, %arg11: memref<1x1x16xf32, #tpu.memory_space<vmem>>, %arg12: memref<1x16x32xf32, #tpu.memory_space<vmem>>, %arg13: memref<1x32xf32, #tpu.memory_space<vmem>>, %arg14: memref<1x8x32xf32, #tpu.memory_space<vmem>>, %arg15: memref<8x32xf32, #tpu.memory_space<vmem>>) attributes {dimension_semantics = [#tpu.dimension_semantics<parallel>, #tpu.dimension_semantics<parallel>, #tpu.dimension_semantics<arbitrary>], iteration_bounds = array<i64: 2, 1, 2>, scalar_prefetch = 0 : i64, scratch_operands = 1 : i64, tpu.core_type = #tpu.core_type<tc>, window_params = [{transform_indices = @transform_0, window_bounds = array<i64: 1, 8, 32>}, {transform_indices = @transform_1, window_bounds = array<i64: 1, 8, 32>}, {transform_indices = @transform_2, window_bounds = array<i64: 1, 8, 32>}, {transform_indices = @transform_3, window_bounds = array<i64: 1, 32, 16>}, {transform_indices = @transform_4, window_bounds = array<i64: 1, 1, 16>}, {transform_indices = @transform_5, window_bounds = array<i64: 1, 32, 16>}, {transform_indices = @transform_6, window_bounds = array<i64: 1, 1, 16>}, {transform_indices = @transform_7, window_bounds = array<i64: 1, 32, 16>}, {transform_indices = @transform_8, window_bounds = array<i64: 1, 1, 16>}, {transform_indices = @transform_9, window_bounds = array<i64: 1, 16, 32>}, {pipeline_mode = #tpu.pipeline_mode<synchronous>, transform_indices = @transform_10, window_bounds = array<i64: 1, 32>}, {transform_indices = @transform_11, window_bounds = array<i64: 1, 8, 32>}]} {
    %c0_i32 = arith.constant 0 : i32
    %0 = arith.cmpi eq, %arg2, %c0_i32 : i32
    %1 = arith.extui %0 : i1 to i32
    %c0_i32_0 = arith.constant 0 : i32
    %2 = arith.cmpi ne, %1, %c0_i32_0 : i32
    scf.if %2 {
      %c0_42 = arith.constant 0 : index
      %c0_43 = arith.constant 0 : index
      %51 = vector.load %arg13[%c0_42, %c0_43] : memref<1x32xf32, #tpu.memory_space<vmem>>, vector<1x32xf32>
      %52 = vector.shape_cast %51 : vector<1x32xf32> to vector<1x32xf32>
      %53 = vector.broadcast %52 : vector<1x32xf32> to vector<8x32xf32>
      %c0_44 = arith.constant 0 : index
      %c0_45 = arith.constant 0 : index
      %54 = vector.load %arg15[%c0_44, %c0_45] : memref<8x32xf32, #tpu.memory_space<vmem>>, vector<8x32xf32>
      tpu.vector_store %arg15[%c0_44, %c0_45], %53 {strides = array<i32>} : memref<8x32xf32, #tpu.memory_space<vmem>>, vector<8x32xf32>,
    } else {
    }
    %c0 = arith.constant 0 : index
    %c0_1 = arith.constant 0 : index
    %c0_2 = arith.constant 0 : index
    %3 = vector.load %arg3[%c0, %c0_1, %c0_2] : memref<1x8x32xf32, #tpu.memory_space<vmem>>, vector<1x8x32xf32>
    %4 = vector.shape_cast %3 : vector<1x8x32xf32> to vector<8x32xf32>
    %c0_3 = arith.constant 0 : index
    %c0_4 = arith.constant 0 : index
    %c0_5 = arith.constant 0 : index
    %5 = vector.load %arg4[%c0_3, %c0_4, %c0_5] : memref<1x8x32xf32, #tpu.memory_space<vmem>>, vector<1x8x32xf32>
    %6 = vector.shape_cast %5 : vector<1x8x32xf32> to vector<8x32xf32>
    %c0_6 = arith.constant 0 : index
    %c0_7 = arith.constant 0 : index
    %c0_8 = arith.constant 0 : index
    %7 = vector.load %arg5[%c0_6, %c0_7, %c0_8] : memref<1x8x32xf32, #tpu.memory_space<vmem>>, vector<1x8x32xf32>
    %8 = vector.shape_cast %7 : vector<1x8x32xf32> to vector<8x32xf32>
    %c0_9 = arith.constant 0 : index
    %c0_10 = arith.constant 0 : index
    %c0_11 = arith.constant 0 : index
    %9 = vector.load %arg6[%c0_9, %c0_10, %c0_11] : memref<1x32x16xf32, #tpu.memory_space<vmem>>, vector<1x32x16xf32>
    %10 = vector.shape_cast %9 : vector<1x32x16xf32> to vector<32x16xf32>
    %c0_12 = arith.constant 0 : index
    %c0_13 = arith.constant 0 : index
    %c0_14 = arith.constant 0 : index
    %11 = vector.load %arg8[%c0_12, %c0_13, %c0_14] : memref<1x32x16xf32, #tpu.memory_space<vmem>>, vector<1x32x16xf32>
    %12 = vector.shape_cast %11 : vector<1x32x16xf32> to vector<32x16xf32>
    %c0_15 = arith.constant 0 : index
    %c0_16 = arith.constant 0 : index
    %c0_17 = arith.constant 0 : index
    %13 = vector.load %arg10[%c0_15, %c0_16, %c0_17] : memref<1x32x16xf32, #tpu.memory_space<vmem>>, vector<1x32x16xf32>
    %14 = vector.shape_cast %13 : vector<1x32x16xf32> to vector<32x16xf32>
    %c0_18 = arith.constant 0 : index
    %c0_19 = arith.constant 0 : index
    %c0_20 = arith.constant 0 : index
    %15 = vector.load %arg12[%c0_18, %c0_19, %c0_20] : memref<1x16x32xf32, #tpu.memory_space<vmem>>, vector<1x16x32xf32>
    %16 = vector.shape_cast %15 : vector<1x16x32xf32> to vector<16x32xf32>
    %cst = arith.constant dense<0.000000e+00> : vector<8x16xf32>
    %17 = tpu.matmul %4, %10, %cst {dimension_numbers = #tpu.dot_dimension_numbers<[1], [0], [0], [1], [0, 0, 1, 1], [], []>} : vector<8x32xf32>, vector<32x16xf32>, vector<8x16xf32> -> vector<8x16xf32>
    %c0_21 = arith.constant 0 : index
    %c0_22 = arith.constant 0 : index
    %c0_23 = arith.constant 0 : index
    %18 = vector.load %arg7[%c0_21, %c0_22, %c0_23] : memref<1x1x16xf32, #tpu.memory_space<vmem>>, vector<1x1x16xf32>
    %19 = vector.shape_cast %18 : vector<1x1x16xf32> to vector<1x16xf32>
    %20 = vector.broadcast %19 : vector<1x16xf32> to vector<8x16xf32>
    %21 = arith.addf %17, %20 : vector<8x16xf32>
    %cst_24 = arith.constant dense<0.000000e+00> : vector<8x16xf32>
    %22 = tpu.matmul %6, %12, %cst_24 {dimension_numbers = #tpu.dot_dimension_numbers<[1], [0], [0], [1], [0, 0, 1, 1], [], []>} : vector<8x32xf32>, vector<32x16xf32>, vector<8x16xf32> -> vector<8x16xf32>
    %c0_25 = arith.constant 0 : index
    %c0_26 = arith.constant 0 : index
    %c0_27 = arith.constant 0 : index
    %23 = vector.load %arg9[%c0_25, %c0_26, %c0_27] : memref<1x1x16xf32, #tpu.memory_space<vmem>>, vector<1x1x16xf32>
    %24 = vector.shape_cast %23 : vector<1x1x16xf32> to vector<1x16xf32>
    %25 = vector.broadcast %24 : vector<1x16xf32> to vector<8x16xf32>
    %26 = arith.addf %22, %25 : vector<8x16xf32>
    %cst_28 = arith.constant dense<0.000000e+00> : vector<8x16xf32>
    %27 = tpu.matmul %8, %14, %cst_28 {dimension_numbers = #tpu.dot_dimension_numbers<[1], [0], [0], [1], [0, 0, 1, 1], [], []>} : vector<8x32xf32>, vector<32x16xf32>, vector<8x16xf32> -> vector<8x16xf32>
    %c0_29 = arith.constant 0 : index
    %c0_30 = arith.constant 0 : index
    %c0_31 = arith.constant 0 : index
    %28 = vector.load %arg11[%c0_29, %c0_30, %c0_31] : memref<1x1x16xf32, #tpu.memory_space<vmem>>, vector<1x1x16xf32>
    %29 = vector.shape_cast %28 : vector<1x1x16xf32> to vector<1x16xf32>
    %30 = vector.broadcast %29 : vector<1x16xf32> to vector<8x16xf32>
    %31 = arith.addf %27, %30 : vector<8x16xf32>
    %cst_32 = arith.constant dense<0.000000e+00> : vector<8x8xf32>
    %32 = tpu.matmul %21, %26, %cst_32 {dimension_numbers = #tpu.dot_dimension_numbers<[1], [1], [0], [0], [0, 0, 1, 0], [], []>} : vector<8x16xf32>, vector<8x16xf32>, vector<8x8xf32> -> vector<8x8xf32>
    %cst_33 = arith.constant dense<0xFF800000> : vector<8xf32>
    %33 = vector.multi_reduction <maximumf>, %32, %cst_33 [1] : vector<8x8xf32> to vector<8xf32>
    %34 = vector.shape_cast %33 : vector<8xf32> to vector<8x1xf32>
    %35 = vector.broadcast %34 : vector<8x1xf32> to vector<8x8xf32>
    %36 = arith.subf %32, %35 : vector<8x8xf32>
    %37 = math.exp %36 : vector<8x8xf32>
    %cst_34 = arith.constant dense<0.000000e+00> : vector<8xf32>
    %38 = vector.multi_reduction <add>, %37, %cst_34 [1] : vector<8x8xf32> to vector<8xf32>
    %39 = vector.shape_cast %38 : vector<8xf32> to vector<8x1xf32>
    %cst_35 = arith.constant dense<0.000000e+00> : vector<8x16xf32>
    %40 = tpu.matmul %37, %31, %cst_35 {dimension_numbers = #tpu.dot_dimension_numbers<[1], [0], [0], [1], [0, 0, 1, 1], [], []>} : vector<8x8xf32>, vector<8x16xf32>, vector<8x16xf32> -> vector<8x16xf32>
    %41 = tpu.reciprocal %39 : vector<8x1xf32> -> vector<8x1xf32>
    %42 = vector.broadcast %41 : vector<8x1xf32> to vector<8x16xf32>
    %43 = arith.mulf %40, %42 : vector<8x16xf32>
    %c0_36 = arith.constant 0 : index
    %c0_37 = arith.constant 0 : index
    %44 = vector.load %arg15[%c0_36, %c0_37] : memref<8x32xf32, #tpu.memory_space<vmem>>, vector<8x32xf32>
    %cst_38 = arith.constant dense<0.000000e+00> : vector<8x32xf32>
    %45 = tpu.matmul %43, %16, %cst_38 {dimension_numbers = #tpu.dot_dimension_numbers<[1], [0], [0], [1], [0, 0, 1, 1], [], []>} : vector<8x16xf32>, vector<16x32xf32>, vector<8x32xf32> -> vector<8x32xf32>
    %46 = arith.addf %44, %45 : vector<8x32xf32>
    %c0_39 = arith.constant 0 : index
    %c0_40 = arith.constant 0 : index
    %47 = vector.load %arg15[%c0_39, %c0_40] : memref<8x32xf32, #tpu.memory_space<vmem>>, vector<8x32xf32>
    tpu.vector_store %arg15[%c0_39, %c0_40], %46 {strides = array<i32>} : memref<8x32xf32, #tpu.memory_space<vmem>>, vector<8x32xf32>,
    %c1_i32 = arith.constant 1 : i32
    %48 = arith.cmpi eq, %arg2, %c1_i32 : i32
    %49 = arith.extui %48 : i1 to i32
    %c0_i32_41 = arith.constant 0 : i32
    %50 = arith.cmpi ne, %49, %c0_i32_41 : i32
    scf.if %50 {
      %c0_42 = arith.constant 0 : index
      %c0_43 = arith.constant 0 : index
      %51 = vector.load %arg15[%c0_42, %c0_43] : memref<8x32xf32, #tpu.memory_space<vmem>>, vector<8x32xf32>
      %c0_44 = arith.constant 0 : index
      %c0_45 = arith.constant 0 : index
      %c0_46 = arith.constant 0 : index
      %52 = vector.load %arg14[%c0_44, %c0_45, %c0_46] : memref<1x8x32xf32, #tpu.memory_space<vmem>>, vector<1x8x32xf32>
      %53 = vector.shape_cast %52 : vector<1x8x32xf32> to vector<8x32xf32>
      %54 = vector.shape_cast %51 : vector<8x32xf32> to vector<1x8x32xf32>
      tpu.vector_store %arg14[%c0_44, %c0_45, %c0_46], %54 {strides = array<i32>} : memref<1x8x32xf32, #tpu.memory_space<vmem>>, vector<1x8x32xf32>,
    } else {
    }
    return
  }
  func.func @transform_0(%arg0: i32, %arg1: i32, %arg2: i32) -> (i32, i32, i32) {
    %c0_i32 = arith.constant 0 : i32
    %c0_i32_0 = arith.constant 0 : i32
    return %arg0, %arg1, %c0_i32 : i32, i32, i32
  }
  func.func @transform_1(%arg0: i32, %arg1: i32, %arg2: i32) -> (i32, i32, i32) {
    %c0_i32 = arith.constant 0 : i32
    %c0_i32_0 = arith.constant 0 : i32
    %c0_i32_1 = arith.constant 0 : i32
    return %arg0, %c0_i32, %c0_i32_0 : i32, i32, i32
  }
  func.func @transform_2(%arg0: i32, %arg1: i32, %arg2: i32) -> (i32, i32, i32) {
    %c0_i32 = arith.constant 0 : i32
    %c0_i32_0 = arith.constant 0 : i32
    %c0_i32_1 = arith.constant 0 : i32
    return %arg0, %c0_i32, %c0_i32_0 : i32, i32, i32
  }
  func.func @transform_3(%arg0: i32, %arg1: i32, %arg2: i32) -> (i32, i32, i32) {
    %c0_i32 = arith.constant 0 : i32
    %c0_i32_0 = arith.constant 0 : i32
    %c0_i32_1 = arith.constant 0 : i32
    return %arg2, %c0_i32, %c0_i32_0 : i32, i32, i32
  }
  func.func @transform_4(%arg0: i32, %arg1: i32, %arg2: i32) -> (i32, i32, i32) {
    %c0_i32 = arith.constant 0 : i32
    %c0_i32_0 = arith.constant 0 : i32
    %c0_i32_1 = arith.constant 0 : i32
    return %arg2, %c0_i32, %c0_i32_0 : i32, i32, i32
  }
  func.func @transform_5(%arg0: i32, %arg1: i32, %arg2: i32) -> (i32, i32, i32) {
    %c0_i32 = arith.constant 0 : i32
    %c0_i32_0 = arith.constant 0 : i32
    %c0_i32_1 = arith.constant 0 : i32
    return %arg2, %c0_i32, %c0_i32_0 : i32, i32, i32
  }
  func.func @transform_6(%arg0: i32, %arg1: i32, %arg2: i32) -> (i32, i32, i32) {
    %c0_i32 = arith.constant 0 : i32
    %c0_i32_0 = arith.constant 0 : i32
    %c0_i32_1 = arith.constant 0 : i32
    return %arg2, %c0_i32, %c0_i32_0 : i32, i32, i32
  }
  func.func @transform_7(%arg0: i32, %arg1: i32, %arg2: i32) -> (i32, i32, i32) {
    %c0_i32 = arith.constant 0 : i32
    %c0_i32_0 = arith.constant 0 : i32
    %c0_i32_1 = arith.constant 0 : i32
    return %arg2, %c0_i32, %c0_i32_0 : i32, i32, i32
  }
  func.func @transform_8(%arg0: i32, %arg1: i32, %arg2: i32) -> (i32, i32, i32) {
    %c0_i32 = arith.constant 0 : i32
    %c0_i32_0 = arith.constant 0 : i32
    %c0_i32_1 = arith.constant 0 : i32
    return %arg2, %c0_i32, %c0_i32_0 : i32, i32, i32
  }
  func.func @transform_9(%arg0: i32, %arg1: i32, %arg2: i32) -> (i32, i32, i32) {
    %c0_i32 = arith.constant 0 : i32
    %c0_i32_0 = arith.constant 0 : i32
    %c0_i32_1 = arith.constant 0 : i32
    return %arg2, %c0_i32, %c0_i32_0 : i32, i32, i32
  }
  func.func @transform_10(%arg0: i32, %arg1: i32, %arg2: i32) -> (i32, i32) {
    %c0_i32 = arith.constant 0 : i32
    %c0_i32_0 = arith.constant 0 : i32
    %c0_i32_1 = arith.constant 0 : i32
    return %c0_i32, %c0_i32_0 : i32, i32
  }
  func.func @transform_11(%arg0: i32, %arg1: i32, %arg2: i32) -> (i32, i32, i32) {
    %c0_i32 = arith.constant 0 : i32
    %c0_i32_0 = arith.constant 0 : i32
    return %arg0, %arg1, %c0_i32 : i32, i32, i32
  }
}

</mosaic_0001>

<bundles_post_ra>
// kernel: tpu_custom_call.1
= control target key start
LH: loop header
LB: loop body
LE: loop exit
PB: predicated region body
PF: predicated region fallthrough
CT: control target
= control target key end

     0   :  { %s1470_s0 = inlined_call_operand.vmem [shape: f32[2,8,32], index: 0, kind: input, shape index: {}]   ;;  %s1471_s1 = inlined_call_operand.vmem [shape: f32[2,8,32], index: 1, kind: input, shape index: {}]   ;;  %s1472_s2 = inlined_call_operand.vmem [shape: f32[2,8,32], index: 2, kind: input, shape index: {}]   ;;  %s1473_s3 = inlined_call_operand.vmem [shape: f32[2,32,16], index: 3, kind: input, shape index: {}]   ;;  %s1474_s4 = inlined_call_operand.vmem [shape: f32[2,1,16], index: 4, kind: input, shape index: {}]   ;;  %s1475_s5 = inlined_call_operand.vmem [shape: f32[2,32,16], index: 5, kind: input, shape index: {}]   ;;  %s1476_s6 = inlined_call_operand.vmem [shape: f32[2,1,16], index: 6, kind: input, shape index: {}]   ;;  %s1477_s7 = inlined_call_operand.vmem [shape: f32[2,32,16], index: 7, kind: input, shape index: {}]   ;;  %s1478_s8 = inlined_call_operand.vmem [shape: f32[2,1,16], index: 8, kind: input, shape index: {}]   ;;  %s1479_s9 = inlined_call_operand.vmem [shape: f32[2,16,32], index: 9, kind: input, shape index: {}]   ;;  %s1480_s10 = inlined_call_operand.vmem [shape: f32[1,32], index: 10, kind: input, shape index: {}]   ;;  %s1481_s11 = inlined_call_operand.hbm [shape: f32[2,8,32], index: 11, kind: output, shape index: {}]  }
   0x1   :  { %1496 = sst [smem:[#allocation18_spill]] %s1470_s0 }
   0x2   :  { %1497 = sst [smem:[#allocation19_spill]] %s1473_s3 }
   0x3   :  { %1498 = sst [smem:[#allocation20_spill]] %s1481_s11 }
   0x4   :  { %16 = vsyncpa [#allocation4], 0 }
   0x5   :  { %18 = vsyncpa [#allocation4 + $0x1], 0  ;;  %s1248_s17 = smov 0   ;;  %s1250_s18 = smov 0  }
   0x6   :  { %s1252_s19 = smov 0   ;;  %s1254_s20 = smov 0  }
   0x7   :  { %s1256_s21 = smov 0   ;;  %s1258_s22 = smov 0  }
   0x8   :  { %s1260_s23 = smov 0   ;;  %s1262_s24 = smov 0  }
   0x9 LB: > { %1499 = sst [smem:[#allocation6_spill]] %s1158_s17  ;;  %s979_s25 = sadd.s32 4294967295, %s1186_s24   ;;  %s1186_s24 = sphi %s1262_s24, %s24_s24   ;;  %s1182_s23 = sphi %s1260_s23, %s1535_s23   ;;  %s1178_s22 = sphi %s1258_s22, %s1534_s22   ;;  %s1174_s21 = sphi %s1256_s21, %s1533_s21   ;;  %s1170_s20 = sphi %s1254_s20, %s1532_s20   ;;  %s1166_s19 = sphi %s1252_s19, %s1531_s19   ;;  %s1162_s18 = sphi %s1250_s18, %s1530_s18   ;;  %s1158_s17 = sphi %s1248_s17, %s1529_s17  }
   0xa   : > { %1500 = sst [smem:[#allocation7_spill]] %s1162_s18  ;;  %s980_s26 = sadd.s32 4294967294, %s1186_s24  }
   0xb   : > { %1501 = sst [smem:[#allocation8_spill]] %s1166_s19  ;;  %s36_s27 = sadd.s32 1, %s1178_s22 }
   0xc   : > { %1502 = sst [smem:[#allocation9_spill]] %s1174_s21  ;;  %p37_p0 = scmp.ge.s32.totalorder %s36_s27, 2 }
   0xd   : > { %1503 = sst [smem:[#allocation10_spill]] %s1178_s22  ;;  %s43_s28 = sadd.s32 1, %s1182_s23 }
   0xe   : > { %1504 = sst [smem:[#allocation11_spill]] %s1182_s23  ;;  %p345_p1 = scmp.ne.s32.totalorder %s1166_s19, %s1162_s18 }
   0xf   : > { %1505 = sst [smem:[#allocation12_spill]] %s1186_s24  ;;  %p346_p2 = scmp.eq.s32.totalorder %s979_s25, 3 }
  0x10   : > { %s1537_s27 = smov (%p37_p0, %s36_s27), 0  ;;  %s1539_s28 = smov (!%p37_p0, %s43_s28), %s1182_s23 }
  0x11   : > { %1506 = sst [smem:[#allocation13_spill]] %s1537_s27  ;;  %p1297_p3 = por %p346_p2, %p345_p1 }
  0x12   : > { %p351_p4 = scmp.ne.s32.totalorder %s1162_s18, %s1158_s17  ;;  %p45_p5 = scmp.ge.s32.totalorder %s1539_s28, 2 }
  0x13   : > { %s1507_s29 = scalar_select %p1297_p3, 1, 0 }
  0x14   : > { %p352_p6 = scmp.eq.s32.totalorder %s980_s26, 3  ;;  %p983_p7 = scmp.ge.s32.totalorder %s1186_s24, 1 }
  0x15   : > { %1508 = sst [smem:[#allocation14_spill]] %s1507_s29  ;;  %p447_p8 = scmp.lt.s32.totalorder %s1186_s24, 5 }
  0x16   : > { %s1541_s28 = smov (%p45_p5, %s1539_s28), 0  ;;  %p1307_p9 = por %p352_p6, %p351_p4 }
  0x17   : > { %1509 = sst [smem:[#allocation15_spill]] %s1541_s28  ;;  %p448_p10 = pnand %p983_p7, %p447_p8 }
  0x18   : > { %s1510_s30 = scalar_select %p1307_p9, 1, 0 }
  0x19   : > { %s330_s12 = ssub.s32 %s1182_s23, %s1541_s28  ;;  %s335_s13 = sadd.s32 1, %s1166_s19 }
  0x1a   : > { %1511 = sst [smem:[#allocation16_spill]] %s1510_s30  ;;  %p333_p11 = scmp.eq.s32.totalorder %s330_s12, 0 }
  0x1b   : > { %451 = sbr.rel (%p448_p10) target bundleno = 739 (0x2e3), region = 64  ;;  %s1483_s15 = sand.u32 (!%p448_p10), 1, %s1162_s18  }
  0x1c   : > { %s1315_s14 = scalar_select %p333_p11, %s1166_s19, %s335_s13  }
  0x1d   : > { %p526_p12 = scmp.lt.s32.totalorder (!%p448_p10), %s1174_s21, 1  ;;  %s1321_s16 = sshll.u32 (!%p448_p10), %s1483_s15, 3 }
  0x1e   : > { %1512 = sst [smem:[#allocation17_spill]] %s1315_s14  ;;  %p541_p13 = scmp.lt.s32.totalorder (!%p448_p10), %s1170_s20, 1 }
  0x1f   : > { %s1514_s3 = sld [smem:[#allocation19_spill]] (!%p448_p10)  ;;  %p996_p0 = scmp.ne.s32.totalorder (!%p448_p10), %s1170_s20, 0 }
  0x20   : > { %s527_s25 = scalar_select %p526_p12, %s1174_s21, 1 }
  0x21   : > { %s1326_s26 = scalar_select %p541_p13, %s1170_s20, 1 }
  0x22   : > { %s1328_s12 = sshll.u32 %s527_s25, 3  ;;  %s525_s21 = scalar_lea.vmem [#allocation3], %s1321_s16 }
  0x23   : > { %s1009_s17 = sshll.u32 %s1326_s26, 5  ;;  %s556_s27 = scalar_lea.vmem %s1476_s6, %s1326_s26 }
  0x24   : > { %s553_s15 = scalar_lea.vmem %s1475_s5, %s1009_s17  ;;  %s1360_s14 = scalar_lea.vmem %s1477_s7, %s1009_s17 }
  0x25   : > { %s545_s25 = scalar_lea.vmem %s1514_s3, %s1009_s17  ;;  %s564_s24 = scalar_lea.vmem %s1478_s8, %s1326_s26 }
  0x26   : > { %s1012_s3 = sshll.u32 %s1326_s26, 4  ;;  %573 = sbr.rel (%p996_p0) target bundleno = 45 (0x2d), region = 68 }
  0x27   : > { %s1370_s28 = scalar_lea.vmem %s1479_s9, %s1012_s3 }
  0x2b   : > { %v1084_v0 = vld [vmem:[%s1480_s10] ss:$0 sm:$0xff]  ;;  %vm578_vm0 = vcmask 261120  }
  0x2c   : > { %579 = vst.msk [vmem:[#allocation2] sm:$0xff] %vm578_vm0, %v1084_v0 }
  0x2d PF: > { %v590_v1 = vld [vmem:[%s553_s15 + $0x18] sm:$0xff]  ;;  %v589_v2 = vld [vmem:[%s553_s15 + $0x10] sm:$0xff]  ;;  %v588_v5 = vld [vmem:[%s553_s15 + $0x8] sm:$0xff]  ;;  %s1515_s22 = scalar_lea.vmem %s1471_s1, %s1328_s12  ;;  %vm601_vm1 = vcmask 261120   ;;  %s1516_s19 = sld [smem:[#allocation18_spill]]  ;;  %vm679_vm2 = vcmask 130048  }
  0x2e   : > { %v586_v3 = vld [vmem:[%s545_s25 + $0x18] sm:$0xff]  ;;  %644 = vmatpush.msra.mxu1 %v590_v1  ;;  %v585_v4 = vld [vmem:[%s545_s25 + $0x10] sm:$0xff]  ;;  %v584_v6 = vld [vmem:[%s545_s25 + $0x8] sm:$0xff]  ;;  %s1518_s18 = scalar_lea.vmem %s1472_s2, %s1328_s12  ;;  %s1519_s17 = scalar_lea.vmem %s1474_s4, %s1326_s26  ;;  %vm706_vm3 = vcmask 64512  }
  0x2f   : > { %617 = vmatpush.msra.mxu0 %v586_v3  ;;  %v587_v7 = vld [vmem:[%s553_s15] sm:$0xff]  ;;  %v594_v11 = vld [vmem:[%s1360_s14 + $0x18] sm:$0xff]  ;;  %v593_v12 = vld [vmem:[%s1360_s14 + $0x10] sm:$0xff]  ;;  %p1004_p1 = scmp.ne.s32.totalorder %s1170_s20, 1 }
  0x30   : > { %645 = vmatpush.msra.mxu1 %v589_v2  ;;  %v583_v8 = vld [vmem:[%s545_s25] sm:$0xff]  ;;  %671 = vmatpush.msra.mxu2 %v594_v11  ;;  %v592_v13 = vld [vmem:[%s1360_s14 + $0x8] sm:$0xff] }
  0x31   : > { %618 = vmatpush.msra.mxu0 %v585_v4  ;;  %v581_v9 = vld [vmem:[%s1515_s22] sm:$0xff]  ;;  %v596_v32 = vld [vmem:[%s1370_s28 + $0x8] sm:$0xff] }
  0x32   : > { %646 = vmatpush.msra.mxu1 %v588_v5  ;;  %672 = vmatpush.msra.mxu2 %v593_v12  ;;  %v591_v14 = vld [vmem:[%s1360_s14] sm:$0xff] }
  0x33   : > { %619 = vmatpush.msra.mxu0 %v584_v6  ;;  %s1517_s11 = scalar_lea.vmem %s1516_s19, %s1328_s12  ;;  %v582_v15 = vld [vmem:[%s1518_s18] sm:$0xff] }
  0x34   : > { %v580_v10 = vld [vmem:[%s1517_s11] sm:$0xff]  ;;  %647 = vmatpush.msra.mxu1 %v587_v7  ;;  %673 = vmatpush.msra.mxu2 %v592_v13 }
  0x35   : > { %620 = vmatpush.msra.mxu0 %v583_v8  ;;  %998 = vmatmul.msk.f32.vlgmr.msra.gmra.mxu1 %vm601_vm1, %v581_v9  ;;  %v1085_v16 = vld [vmem:[%s556_s27] ss:$0 sm:$0xff] }
  0x36   : > { %997 = vmatmul.msk.f32.vlgmr.msra.gmra.mxu0 %vm601_vm1, %v580_v10  ;;  %674 = vmatpush.msra.mxu2 %v591_v14  ;;  %v1086_v17 = vld [vmem:[%s1519_s17] ss:$0 sm:$0xff] }
  0x37   : > { %999 = vmatmul.msk.f32.vlgmr.msra.gmra.mxu2 %vm601_vm1, %v582_v15  ;;  %v1087_v24 = vld [vmem:[%s564_s24] ss:$0 sm:$0xff]  ;;  %772 = vmatpush.msrb.mxu0 %v596_v32 }
  0x38   : > { %v595_v33 = vld [vmem:[%s1370_s28] sm:$0xff] }
  0x39   : > { %773 = vmatpush.msrb.mxu0 %v595_v33  ;;  %v754_v47 = vld [vmem:[#allocation2] sm:$0xff] }
  0xb2   : > { %v649_v18 = vpop.f32.mrf.mxu1 }
  0xb3   : > { %v622_v19 = vpop.f32.mrf.mxu0  ;;  %v650_v20 = vadd.f32 %v1085_v16, %v649_v18 }
  0xb4   : > { %v623_v21 = vadd.f32 %v1086_v17, %v622_v19 }
  0xb5   : > { %1000 = vmatpush.xpose.msk.msra.mxu3 %vm679_vm2, %v650_v20 }
  0xb8   : > { %1001 = vmatmul.msk.f32.vlgmr.msra.gmra.mxu3 %vm679_vm2, %v623_v21 }
  0xba   : > { %v676_v25 = vpop.f32.mrf.mxu2 }
  0xbb   : > { %v677_v26 = vadd.f32 %v1087_v24, %v676_v25 }
  0xbd   : > { %734 = vmatpush.msrb.mxu3 %v677_v26 }
 0x13b   : > { %v703_v22 = vpop.f32.mrf.mxu3 }
 0x13c   : > { %v707_v23 = vsel %vm706_vm3, %v703_v22, -inf }
 0x13d   : > { %708 = vmax.xlane.f32.xlu0 %v707_v23 }
 0x1b0   : > { %v709_v27 = vpop.xlane.xlu0 %708 }
 0x1b1   : > { %v710_v28 = vsub.f32 %v703_v22, %v709_v27 }
 0x1b3   : > { %v711_v29 = vmul.f32 1.442695, %v710_v28 }
 0x1b5   : > { %1088 = vpow2.f32 %v711_v29 }
 0x1bb   : > { %v1089_v30 = vpop.eup %1088 }
 0x1bc   : > { %1002 = vmatmul.msk.f32.vlgmr.msrb.gmra.mxu3 %vm706_vm3, %v1089_v30  ;;  %v713_v31 = vsel %vm706_vm3, %v1089_v30, 0.0 }
 0x1bd   : > { %714 = vadd.xlane.f32.xlu0 %v713_v31 }
 0x230   : > { %v715_v34 = vpop.xlane.xlu0 %714 }
 0x231   : > { %1090 = vrcp.f32 %v715_v34  ;;  %v750_v38 = vand.u32 2147483648, %v715_v34  ;;  %v748_v40 = vand.u32 2147483647, %v715_v34  ;;  %vm744_vm5 = vweird.f32 %v715_v34 }
 0x233   : > { %v751_v42 = vor.u32 1.1754944e-38, %v750_v38  ;;  %vm749_vm7 = vcmp.eq.f32.partialorder %v748_v40, 8.507059e+37 }
 0x237   : > { %v1091_v35 = vpop.eup %1090 }
 0x238   : > { %v740_v36 = vmul.f32 %v1091_v35, %v715_v34  ;;  %vm745_vm4 = vweird.f32 %v1091_v35 }
 0x239   : > { %vm746_vm6 = vmor %vm744_vm5, %vm745_vm4 }
 0x23a   : > { %v741_v37 = vsub.f32 1.0, %v740_v36 }
 0x23c   : > { %v742_v39 = vmul.f32 %v1091_v35, %v741_v37 }
 0x23e   : > { %v743_v41 = vadd.f32 %v1091_v35, %v742_v39 }
 0x23f   : > { %v736_v44 = vpop.f32.mrf.mxu3 }
 0x240   : > { %v747_v43 = vsel %vm746_vm6, %v1091_v35, %v743_v41 }
 0x241   : > { %v752_v45 = vsel %vm749_vm7, %v751_v42, %v747_v43 }
 0x242   : > { %v753_v46 = vmul.f32 %v752_v45, %v736_v44 }
 0x244   : > { %1003 = vmatmul.msk.f32.vlgmr.msrb.gmra.mxu0 %vm679_vm2, %v753_v46 }
 0x2c0   : > { %783 = sbr.rel (%p1004_p1) target bundleno = 717 (0x2cd), region = 72 }
 0x2c1   : > { %v775_v48 = vpop.f32.mrf.mxu0 }
 0x2c2   : > { %v778_v49 = vadd.f32 %v775_v48, %v754_v47 }
 0x2c4   : > { %779 = vst.msk [vmem:[#allocation2] sm:$0xff] %vm601_vm1, %v778_v49 }
 0x2cb   : > { %v784_v50 = vld [vmem:[#allocation2] sm:$0xff] }
 0x2cc   : > { %785 = vst.msk [vmem:[%s525_s21] sm:$0xff] %vm601_vm1, %v784_v50 }
 0x2cd PF: > { %s1520_s26 = sld [smem:[#allocation9_spill]]  ;;  %s800_s15 = sshll.u32 %s525_s21, 4  ;;  %s801_s15 = int_to_ptr.vmem [resolvable:$true] %s800_s15 }
 0x2ce   : > { %s1521_s28 = sld [smem:[#allocation7_spill]] }
 0x2cf   : > { %s1523_s23 = sld [smem:[#allocation20_spill]] }
 0x2d3   : > { %s1006_s24 = sshll.u32 %s1520_s26, 3 }
 0x2d4   : > { %s1525_s25 = sand.u32 1, %s1521_s28  }
 0x2d5   : > { %s1524_s11 = smov %s1523_s23  ;;  %s798_s19 = scalar_lea.hbm %s1523_s23, %s1006_s24 }
 0x2d6   : > { %s802_s20 = sshll.u32 %s798_s19, 4  ;;  %s787_s18 = scalar_lea.sflag [#allocation4], %s1525_s25  ;;  %s803_s20 = int_to_ptr.hbm [resolvable:$true] %s802_s20 }
 0x2d7   : > { %s1106_s29 = sshra.s32 %s803_s20, 4  ;;  %s1112_s17 = scalar_lea.hbm %s1524_s11, 16  ;;  %s1107_s29 = int_to_ptr.hbm [resolvable:$true] %s1106_s29 }
 0x2d8   : > { %s1108_s0 = scalar_lea.hbm %s1107_s29, 8  ;;  %p1113_p6 = scmp.lt.s32.totalorder %s1107_s29, %s1524_s11 }
 0x2d9   : > { %p1109_p2 = scmp.ne.s32.totalorder %s1107_s29, %s1108_s0  ;;  %p1114_p7 = scmp.lt.s32.totalorder %s1112_s17, %s1108_s0 }
 0x2db   : > { %p1110_p4 = pnand %p1109_p2, %p1297_p3  ;;  %p1115_p8 = por %p1114_p7, %p1113_p6 }
 0x2dd   : > { %p1111_p5 = pneg %p1110_p4 }
 0x2df   : > { %p1116_p10 = pnand %p1115_p8, %p1111_p5 }
 0x2e1   : > { %1119 = shalt.err (!%p1116_p10)
}
 0x2e2   : > { %1013 = dma.vmem_to_hbm [thread:$0]  (%p1297_p3), %s801_s15, 128, %s803_s20, %s787_s18  }
 0x2e3 PF: > { %s1526_s16 = sld [smem:[#allocation12_spill]] }
 0x2e4   : > { %s1527_s21 = sld [smem:[#allocation6_spill]] }
 0x2e9   : > { %p1019_p11 = scmp.ge.s32.totalorder %s1526_s16, 2 }
 0x2ea   : > { %s814_s28 = sand.u32 1, %s1527_s21  }
 0x2eb   : > { %p1016_p12 = pnand %p1019_p11, %p1307_p9  ;;  %s815_s24 = scalar_lea.sflag [#allocation4], %s814_s28 }
 0x2ed   : > { %p1017_p13 = pneg %p1016_p12 }
 0x2ef   : > { %1153 = dma.done.wait (%p1017_p13), %s815_s24, 128  }
 0x2f0   : > { %1155 = vsyncadd (%p1017_p13), %s815_s24, 4294967168  ;;  %s24_s24 = sadd.s32 1, %s1526_s16   ;;  %s1529_s17 = sld [smem:[#allocation7_spill]] }
 0x2f1   : > { %p21_p0 = scmp.ge.s32.totalorder %s24_s24, 6   ;;  %s1530_s18 = sld [smem:[#allocation8_spill]] }
 0x2f2   : > { %s1531_s19 = sld [smem:[#allocation17_spill]] }
 0x2f3   : > { %s1532_s20 = sld [smem:[#allocation10_spill]]  ;;  %23 = sbr.rel (!%p21_p0) target bundleno = 9 (0x9), region = 134 }
 0x2f4   : > { %s1533_s21 = sld [smem:[#allocation11_spill]] }
 0x2f5   : > { %s1534_s22 = sld [smem:[#allocation13_spill]] }
 0x2f6   : > { %s1535_s23 = sld [smem:[#allocation15_spill]] }
 0x2f8   :  { %821 = vsyncpa [#allocation4], 1 }
 0x2f9   :  { %823 = vsyncpa [#allocation4 + $0x1], 1 }

</bundles_post_ra>
